<compile_context>
chip_gen: v6e
topology: v6e:2x2x1
jax: 0.10.0
libtpu: 0.0.40
codegen_flags: <defaults>
</compile_context>

<pallas_src>
import functools
import math

import jax
import jax.numpy as jnp
from jax import lax
from jax.experimental import pallas as pl
from jax.experimental.pallas import tpu as pltpu

R_CS = 0.3
R_C = 6.0
_WIN_SCALE = math.pi / (R_C - R_CS)
_LANE = 128


def _softplus(x):
    return jnp.logaddexp(x, 0.0)


# --------------------------- fused forward kernel ----------------------------
def _fused_kernel(idx_ref, h_ref, w0_ref, b0t_ref,
                  g1w_ref, g1bt_ref, g2w_ref, g2bt_ref,
                  t_ref, out_t_sc, acc_sc,
                  *, e_total, tile_e, node_chunk):
    k = pl.program_id(0)

    # ---- once: out^T = softplus(w0 @ h^T + b0^T) -> [C, N], bf16, resident --
    @pl.when(k == 0)
    def _init():
        ot = lax.dot_general(w0_ref[...], h_ref[...],
                             (((1,), (1,)), ((), ())),
                             preferred_element_type=jnp.float32)     # [C, N]
        out_t_sc[...] = _softplus(ot + b0t_ref[...]).astype(out_t_sc.dtype)
        acc_sc[...] = jnp.zeros_like(acc_sc)

    # ---- in-VMEM gather of source-node features, lane-dense [C, tile_e] ----
    # one-hot matmul gather with bf16 MXU operands (f32 accumulation),
    # chunked over nodes so the transient stays (node_chunk, tile_e).
    idx = idx_ref[...]                                               # [1, tile_e] i32
    n_nodes = out_t_sc.shape[1]
    x = None
    for c0 in range(0, n_nodes, node_chunk):
        c1 = min(c0 + node_chunk, n_nodes)
        rows = lax.broadcasted_iota(jnp.int32, (c1 - c0, 1), 0) + c0  # [chunk, 1]
        onehot = (rows == idx).astype(jnp.bfloat16)                   # [chunk, tile_e]
        part = lax.dot_general(out_t_sc[:, c0:c1], onehot,
                               (((1,), (0,)), ((), ())),
                               preferred_element_type=jnp.float32)    # [C, tile_e]
        x = part if x is None else x + part

    # Padded edge lanes: force a safe positive value BEFORE the reciprocal/cos
    # path (zeroed again after the window), so no inf/NaN can reach A.
    lane = lax.broadcasted_iota(jnp.int32, (1, tile_e), 1) + k * tile_e
    valid = lane < e_total                                            # [1, tile_e]
    x = jnp.where(valid, x, 1.0)

    # ---- SLayer (per-edge / per-column masks, transposed layout) -----------
    r = x[0:1, :]                                                     # r_mark row
    m1 = r < R_CS
    m3 = r > R_C
    # m2 = ~(m1 & m3) is constantly True (R_CS < R_C), so the cosine window
    # always applies; the two reciprocals fold into one.
    rinv = pl.reciprocal(x, approx=True)
    y = jnp.where(m1, rinv, x)          # x after the m1 in-place update
    invy = jnp.where(m1, x, rinv)       # 1/y without a second reciprocal
    z = invy * (0.5 * jnp.cos(_WIN_SCALE * (y - R_CS)) + 0.5)
    xj = jnp.where(m3, 0.0, z)
    xj = jnp.where(valid, xj, 0.0)                                    # [C, tile_e]

    # ---- GLayer (transposed): G^T = g2w @ softplus(g1w @ xj + g1b^T) + g2b^T
    gh = _softplus(jnp.dot(g1w_ref[...], xj,
                           preferred_element_type=jnp.float32) + g1bt_ref[...])
    gt = jnp.dot(g2w_ref[...], gh,
                 preferred_element_type=jnp.float32) + g2bt_ref[...]  # [C, tile_e]

    # ---- A += G^T @ xj   (contract the edge/lane dim)  -> [C, C] ------------
    # (kept f32 for accuracy headroom; casting gt/xj to bf16 is a further
    #  v6e/v7x option when a looser tolerance is acceptable)
    acc_sc[...] += lax.dot_general(gt, xj, (((1,), (1,)), ((), ())),
                                   preferred_element_type=jnp.float32)

    # ---- finalize: t = A @ A^T  ==  (G^T xj)(xj^T G) -------------------------
    @pl.when(k == pl.num_programs(0) - 1)
    def _fin():
        a = acc_sc[...]
        t_ref[...] = lax.dot_general(a, a, (((1,), (1,)), ((), ())),
                                     preferred_element_type=jnp.float32)


def interactions_forward(h, edge_index, edge_weight, edge_attr, params):
    """Pallas implementation of _Interactions.forward. Returns t of shape [C, C]."""
    del edge_weight            # passed to propagate in PyTorch but unused downstream
    del edge_attr              # softplus(short(edge_attr)) is dead w.r.t. the output
    N, H = h.shape
    C = params["w0"].shape[0]
    E = int(edge_index.shape[1])

    if E == 0:                 # degenerate graph: A == 0  ->  t == 0
        return jnp.zeros((C, C), jnp.float32)

    # Node-chunking of the one-hot gather (bounds the per-step transient).
    node_chunk = N if N <= 512 else 512

    # Lane-dense edge tile: deep enough to amortize per-step overhead, small
    # enough that the bf16 (node_chunk x tile_e) one-hot stays <= ~4 MiB
    # (safe on v7x's 64 MiB physical VMEM and v5e's small scoped default).
    e_pad128 = -(-E // _LANE) * _LANE
    budget_cols = (4 << 20) // (2 * node_chunk)
    tile_e = max(_LANE, (min(8192, budget_cols) // _LANE) * _LANE)
    tile_e = min(tile_e, e_pad128)
    num_tiles = -(-E // tile_e)
    e_pad = num_tiles * tile_e

    # glue: PyG lift for flow='source_to_target' -> x_j = x[edge_index[0]]
    # TODO(synk): collect_edge_attr_jump / lift_jump_index_select are not
    # provided; modeled as the standard source-node gather.
    src = edge_index[0].astype(jnp.int32)
    src_padded = jnp.zeros((1, e_pad), jnp.int32).at[0, :E].set(src)

    # pre-transposed biases so the kernel works fully in [C, *] layout
    b0t = params["b0"].T                      # [C, 1]
    g1bt = params["g1b"].T                    # [C, 1]
    g2bt = params["g2b"].T                    # [C, 1]

    const = lambda k: (0, 0)
    kernel = functools.partial(_fused_kernel, e_total=E, tile_e=tile_e,
                               node_chunk=node_chunk)

    # TODO(synk): constant-index inputs (h, weights, biases) would ideally use
    # pipeline_mode=pl.Buffered(1) to avoid pointless double-buffering; left at
    # the default to keep lowering maximally portable.
    # TODO(synk): on v7x, add a leading size-2 "parallel" grid axis splitting
    # the E tiles across both TensorCores (per-core partial A -> wrapper sum).
    # TODO(synk): for very large N, tile the k==0 lin0 prologue over node
    # blocks instead of holding all of h [N, H] resident.
    t = pl.pallas_call(
        kernel,
        out_shape=jax.ShapeDtypeStruct((C, C), jnp.float32),
        grid_spec=pltpu.PrefetchScalarGridSpec(
            num_scalar_prefetch=0,
            grid=(num_tiles,),
            in_specs=[
                pl.BlockSpec((1, tile_e), lambda k: (0, k)),   # src indices tile
                pl.BlockSpec((N, H), const),                   # h
                pl.BlockSpec((C, H), const),                   # w0
                pl.BlockSpec((C, 1), const),                   # b0^T
                pl.BlockSpec((C, C), const),                   # g1w
                pl.BlockSpec((C, 1), const),                   # g1b^T
                pl.BlockSpec((C, C), const),                   # g2w
                pl.BlockSpec((C, 1), const),                   # g2b^T
            ],
            out_specs=pl.BlockSpec((C, C), const),
            scratch_shapes=[
                pltpu.VMEM((C, N), jnp.bfloat16),  # softplus(lin0(h))^T, resident
                pltpu.VMEM((C, C), jnp.float32),   # A accumulator
            ],
        ),
        compiler_params=pltpu.CompilerParams(
            dimension_semantics=("arbitrary",),    # E axis is a reduction
            vmem_limit_bytes=64 * 1024 * 1024,
        ),
    )(src_padded, h, params["w0"], b0t,
      params["g1w"], g1bt, params["g2w"], g2bt)
    return t


# ---------------------------- pure-JAX reference -----------------------------
def reference_forward(h, edge_index, edge_attr, params):
    out = jax.nn.softplus(h @ params["w0"].T + params["b0"])
    _ea = jax.nn.softplus(edge_attr @ params["ws"].T + params["bs"])  # dead path
    x = out[edge_index[0]]
    r = x[:, 0:1]
    m1 = r < R_CS
    m3 = r > R_C
    m2 = ~(m3 & m1)
    y = jnp.where(m1, 1.0 / x, x)
    y = jnp.where(m2, (1.0 / y) * (0.5 * jnp.cos(jnp.pi * (y - R_CS) / (R_C - R_CS)) + 0.5), y)
    xj = jnp.where(m3, 0.0, y)
    G = jax.nn.softplus(xj @ params["g1w"].T + params["g1b"]) @ params["g2w"].T + params["g2b"]
    t = G.T @ xj
    t = t @ xj.T
    t = t @ G
    return t


# ------------------------------ parameter init -------------------------------
def init_params(key, H, C, G):
    # PyTorch Linear default init: U(-1/sqrt(fan_in), 1/sqrt(fan_in))
    def lin(k, out_f, in_f):
        bound = 1.0 / (in_f ** 0.5)
        kw, kb = jax.random.split(k)
        w = jax.random.uniform(kw, (out_f, in_f), jnp.float32, -bound, bound)
        b = jax.random.uniform(kb, (1, out_f), jnp.float32, -bound, bound)
        return w, b

    ks = jax.random.split(key, 4)
    w0, b0 = lin(ks[0], C, H)        # lin0: H -> C
    ws, bs = lin(ks[1], 1, G)        # short: G -> 1 (dead in forward's output)
    g1w, g1b = lin(ks[2], C, C)      # GLayer.gl[0]
    g2w, g2b = lin(ks[3], C, C)      # GLayer.gl[2]
    # TODO(synk): GLayer.weight (16, 100) Parameter is never used in forward; omitted.
    return dict(w0=w0, b0=b0, ws=ws, bs=bs, g1w=g1w, g1b=g1b, g2w=g2w, g2b=g2b)


if __name__ == "__main__":
    key = jax.random.PRNGKey(0)
    N, H, C, G, E = 8, 32, 16, 8, 16   # C=16 to match hard-coded GLayer(num_embeddings=16)

    k1, k2, k3, kp = jax.random.split(key, 4)
    h = jax.random.normal(k1, (N, H), jnp.float32)
    edge_index = jax.random.randint(k2, (2, E), 0, N, jnp.int32)
    edge_attr = jax.random.normal(k3, (E, G), jnp.float32)
    params = init_params(kp, H, C, G)

    t = interactions_forward(h, edge_index, None, edge_attr, params)
    t = jax.block_until_ready(t)

    ref = reference_forward(h, edge_index, edge_attr, params)
    assert t.shape == (C, C)
    assert bool(jnp.all(jnp.isfinite(t)))
    rel_err = float(jnp.max(jnp.abs(t - ref)) / (jnp.max(jnp.abs(ref)) + 1e-6))
    assert rel_err < 2e-2, f"relative error too large: {rel_err}"
    print("KERNEL_OK")
</pallas_src>

<mosaic_0001>
module attributes {stable_mosaic.version = 11 : i64} {
  func.func @_fused_kernel(%arg0: i32, %arg1: memref<1x128xi32, #tpu.memory_space<vmem>>, %arg2: memref<8x32xf32, #tpu.memory_space<vmem>>, %arg3: memref<16x32xf32, #tpu.memory_space<vmem>>, %arg4: memref<16x1xf32, #tpu.memory_space<vmem>>, %arg5: memref<16x16xf32, #tpu.memory_space<vmem>>, %arg6: memref<16x1xf32, #tpu.memory_space<vmem>>, %arg7: memref<16x16xf32, #tpu.memory_space<vmem>>, %arg8: memref<16x1xf32, #tpu.memory_space<vmem>>, %arg9: memref<16x16xf32, #tpu.memory_space<vmem>>, %arg10: memref<16x8xbf16, #tpu.memory_space<vmem>>, %arg11: memref<16x16xf32, #tpu.memory_space<vmem>>) attributes {dimension_semantics = [#tpu.dimension_semantics<arbitrary>], iteration_bounds = array<i64: 1>, scalar_prefetch = 0 : i64, scratch_operands = 2 : i64, tpu.core_type = #tpu.core_type<tc>, window_params = [{transform_indices = @transform_0, window_bounds = array<i64: 1, 128>}, {pipeline_mode = #tpu.pipeline_mode<synchronous>, transform_indices = @transform_1, window_bounds = array<i64: 8, 32>}, {pipeline_mode = #tpu.pipeline_mode<synchronous>, transform_indices = @transform_2, window_bounds = array<i64: 16, 32>}, {pipeline_mode = #tpu.pipeline_mode<synchronous>, transform_indices = @transform_3, window_bounds = array<i64: 16, 1>}, {pipeline_mode = #tpu.pipeline_mode<synchronous>, transform_indices = @transform_4, window_bounds = array<i64: 16, 16>}, {pipeline_mode = #tpu.pipeline_mode<synchronous>, transform_indices = @transform_5, window_bounds = array<i64: 16, 1>}, {pipeline_mode = #tpu.pipeline_mode<synchronous>, transform_indices = @transform_6, window_bounds = array<i64: 16, 16>}, {pipeline_mode = #tpu.pipeline_mode<synchronous>, transform_indices = @transform_7, window_bounds = array<i64: 16, 1>}, {pipeline_mode = #tpu.pipeline_mode<synchronous>, transform_indices = @transform_8, window_bounds = array<i64: 16, 16>}]} {
    %c0_i32 = arith.constant 0 : i32
    %0 = arith.cmpi eq, %arg0, %c0_i32 : i32
    %1 = arith.extui %0 : i1 to i32
    %c0_i32_0 = arith.constant 0 : i32
    %2 = arith.cmpi ne, %1, %c0_i32_0 : i32
    scf.if %2 {
      %c0_33 = arith.constant 0 : index
      %c0_34 = arith.constant 0 : index
      %86 = vector.load %arg3[%c0_33, %c0_34] : memref<16x32xf32, #tpu.memory_space<vmem>>, vector<16x32xf32>
      %c0_35 = arith.constant 0 : index
      %c0_36 = arith.constant 0 : index
      %87 = vector.load %arg2[%c0_35, %c0_36] : memref<8x32xf32, #tpu.memory_space<vmem>>, vector<8x32xf32>
      %cst_37 = arith.constant dense<0.000000e+00> : vector<16x8xf32>
      %88 = tpu.matmul %86, %87, %cst_37 {dimension_numbers = #tpu.dot_dimension_numbers<[1], [1], [0], [0], [0, 0, 1, 0], [], []>} : vector<16x32xf32>, vector<8x32xf32>, vector<16x8xf32> -> vector<16x8xf32>
      %c0_38 = arith.constant 0 : index
      %c0_39 = arith.constant 0 : index
      %89 = vector.load %arg4[%c0_38, %c0_39] : memref<16x1xf32, #tpu.memory_space<vmem>>, vector<16x1xf32>
      %90 = vector.broadcast %89 : vector<16x1xf32> to vector<16x8xf32>
      %91 = arith.addf %88, %90 : vector<16x8xf32>
      %cst_40 = arith.constant 0.000000e+00 : f32
      %92 = vector.broadcast %cst_40 : f32 to vector<16x8xf32>
      %93 = arith.maximumf %91, %92 : vector<16x8xf32>
      %94 = vector.broadcast %cst_40 : f32 to vector<16x8xf32>
      %95 = arith.subf %91, %94 : vector<16x8xf32>
      %96 = arith.cmpf one, %95, %95 : vector<16x8xf32>
      %97 = vector.broadcast %cst_40 : f32 to vector<16x8xf32>
      %98 = arith.addf %91, %97 : vector<16x8xf32>
      %99 = math.absf %95 : vector<16x8xf32>
      %cst_41 = arith.constant 0.000000e+00 : f32
      %100 = vector.broadcast %cst_41 : f32 to vector<16x8xf32>
      %101 = arith.subf %100, %99 : vector<16x8xf32>
      %102 = math.exp %101 : vector<16x8xf32>
      %103 = math.log1p %102 : vector<16x8xf32>
      %104 = arith.addf %93, %103 : vector<16x8xf32>
      %105 = arith.select %96, %98, %104 : vector<16x8xi1>, vector<16x8xf32>
      %106 = arith.truncf %105 : vector<16x8xf32> to vector<16x8xbf16>
      %c0_42 = arith.constant 0 : index
      %c0_43 = arith.constant 0 : index
      %107 = vector.load %arg10[%c0_42, %c0_43] : memref<16x8xbf16, #tpu.memory_space<vmem>>, vector<16x8xbf16>
      tpu.vector_store %arg10[%c0_42, %c0_43], %106 {strides = array<i32>} : memref<16x8xbf16, #tpu.memory_space<vmem>>, vector<16x8xbf16>,
      %cst_44 = arith.constant 0.000000e+00 : f32
      %108 = vector.broadcast %cst_44 : f32 to vector<16x16xf32>
      %c0_45 = arith.constant 0 : index
      %c0_46 = arith.constant 0 : index
      %109 = vector.load %arg11[%c0_45, %c0_46] : memref<16x16xf32, #tpu.memory_space<vmem>>, vector<16x16xf32>
      tpu.vector_store %arg11[%c0_45, %c0_46], %108 {strides = array<i32>} : memref<16x16xf32, #tpu.memory_space<vmem>>, vector<16x16xf32>,
    } else {
    }
    %c0 = arith.constant 0 : index
    %c0_1 = arith.constant 0 : index
    %3 = vector.load %arg1[%c0, %c0_1] : memref<1x128xi32, #tpu.memory_space<vmem>>, vector<1x128xi32>
    %4 = tpu.iota {dimensions = array<i32: 0>} : vector<8x1xi32>
    %c0_i32_2 = arith.constant 0 : i32
    %5 = vector.broadcast %c0_i32_2 : i32 to vector<8x1xi32>
    %6 = arith.addi %4, %5 : vector<8x1xi32>
    %7 = vector.broadcast %6 : vector<8x1xi32> to vector<8x128xi32>
    %8 = vector.broadcast %3 : vector<1x128xi32> to vector<8x128xi32>
    %9 = arith.cmpi eq, %7, %8 : vector<8x128xi32>
    %10 = arith.extui %9 : vector<8x128xi1> to vector<8x128xi32>
    %11 = arith.sitofp %10 : vector<8x128xi32> to vector<8x128xf32>
    %12 = arith.truncf %11 : vector<8x128xf32> to vector<8x128xbf16>
    %c0_3 = arith.constant 0 : index
    %c0_4 = arith.constant 0 : index
    %13 = vector.load %arg10[%c0_3, %c0_4] : memref<16x8xbf16, #tpu.memory_space<vmem>>, vector<16x8xbf16>
    %cst = arith.constant dense<0.000000e+00> : vector<16x128xf32>
    %14 = tpu.matmul %13, %12, %cst {dimension_numbers = #tpu.dot_dimension_numbers<[1], [0], [0], [1], [0, 0, 1, 1], [], []>} : vector<16x8xbf16>, vector<8x128xbf16>, vector<16x128xf32> -> vector<16x128xf32>
    %15 = tpu.iota {dimensions = array<i32: 1>} : vector<1x128xi32>
    %c128_i32 = arith.constant 128 : i32
    %16 = arith.muli %arg0, %c128_i32 : i32
    %17 = vector.broadcast %16 : i32 to vector<1x128xi32>
    %18 = arith.addi %15, %17 : vector<1x128xi32>
    %c16_i32 = arith.constant 16 : i32
    %19 = vector.broadcast %c16_i32 : i32 to vector<1x128xi32>
    %20 = arith.cmpi slt, %18, %19 : vector<1x128xi32>
    %cst_5 = arith.constant 1.000000e+00 : f32
    %21 = vector.shape_cast %20 : vector<1x128xi1> to vector<1x128xi1>
    %22 = vector.broadcast %21 : vector<1x128xi1> to vector<16x128xi1>
    %23 = vector.broadcast %cst_5 : f32 to vector<16x128xf32>
    %24 = arith.select %22, %14, %23 : vector<16x128xi1>, vector<16x128xf32>
    %25 = vector.extract_strided_slice %24 {offsets = [0, 0], sizes = [1, 128], strides = [1, 1]} : vector<16x128xf32> to vector<1x128xf32>
    %cst_6 = arith.constant 3.000000e-01 : f32
    %26 = vector.broadcast %cst_6 : f32 to vector<1x128xf32>
    %27 = arith.cmpf olt, %25, %26 : vector<1x128xf32>
    %cst_7 = arith.constant 6.000000e+00 : f32
    %28 = vector.broadcast %cst_7 : f32 to vector<1x128xf32>
    %29 = arith.cmpf ogt, %25, %28 : vector<1x128xf32>
    %30 = tpu.reciprocal %24 {approx = true} : vector<16x128xf32> -> vector<16x128xf32>
    %31 = vector.shape_cast %27 : vector<1x128xi1> to vector<1x128xi1>
    %32 = vector.broadcast %31 : vector<1x128xi1> to vector<16x128xi1>
    %33 = arith.select %32, %30, %24 : vector<16x128xi1>, vector<16x128xf32>
    %34 = vector.shape_cast %27 : vector<1x128xi1> to vector<1x128xi1>
    %35 = vector.broadcast %34 : vector<1x128xi1> to vector<16x128xi1>
    %36 = arith.select %35, %24, %30 : vector<16x128xi1>, vector<16x128xf32>
    %cst_8 = arith.constant 3.000000e-01 : f32
    %37 = vector.broadcast %cst_8 : f32 to vector<16x128xf32>
    %38 = arith.subf %33, %37 : vector<16x128xf32>
    %cst_9 = arith.constant 0.55115658 : f32
    %39 = vector.broadcast %cst_9 : f32 to vector<16x128xf32>
    %40 = arith.mulf %39, %38 : vector<16x128xf32>
    %41 = math.cos %40 : vector<16x128xf32>
    %cst_10 = arith.constant 5.000000e-01 : f32
    %42 = vector.broadcast %cst_10 : f32 to vector<16x128xf32>
    %43 = arith.mulf %42, %41 : vector<16x128xf32>
    %cst_11 = arith.constant 5.000000e-01 : f32
    %44 = vector.broadcast %cst_11 : f32 to vector<16x128xf32>
    %45 = arith.addf %43, %44 : vector<16x128xf32>
    %46 = arith.mulf %36, %45 : vector<16x128xf32>
    %cst_12 = arith.constant 0.000000e+00 : f32
    %47 = vector.shape_cast %29 : vector<1x128xi1> to vector<1x128xi1>
    %48 = vector.broadcast %47 : vector<1x128xi1> to vector<16x128xi1>
    %49 = vector.broadcast %cst_12 : f32 to vector<16x128xf32>
    %50 = arith.select %48, %49, %46 : vector<16x128xi1>, vector<16x128xf32>
    %cst_13 = arith.constant 0.000000e+00 : f32
    %51 = vector.shape_cast %20 : vector<1x128xi1> to vector<1x128xi1>
    %52 = vector.broadcast %51 : vector<1x128xi1> to vector<16x128xi1>
    %53 = vector.broadcast %cst_13 : f32 to vector<16x128xf32>
    %54 = arith.select %52, %50, %53 : vector<16x128xi1>, vector<16x128xf32>
    %c0_14 = arith.constant 0 : index
    %c0_15 = arith.constant 0 : index
    %55 = vector.load %arg5[%c0_14, %c0_15] : memref<16x16xf32, #tpu.memory_space<vmem>>, vector<16x16xf32>
    %cst_16 = arith.constant dense<0.000000e+00> : vector<16x128xf32>
    %56 = tpu.matmul %55, %54, %cst_16 {dimension_numbers = #tpu.dot_dimension_numbers<[1], [0], [0], [1], [0, 0, 1, 1], [], []>} : vector<16x16xf32>, vector<16x128xf32>, vector<16x128xf32> -> vector<16x128xf32>
    %c0_17 = arith.constant 0 : index
    %c0_18 = arith.constant 0 : index
    %57 = vector.load %arg6[%c0_17, %c0_18] : memref<16x1xf32, #tpu.memory_space<vmem>>, vector<16x1xf32>
    %58 = vector.broadcast %57 : vector<16x1xf32> to vector<16x128xf32>
    %59 = arith.addf %56, %58 : vector<16x128xf32>
    %cst_19 = arith.constant 0.000000e+00 : f32
    %60 = vector.broadcast %cst_19 : f32 to vector<16x128xf32>
    %61 = arith.maximumf %59, %60 : vector<16x128xf32>
    %62 = vector.broadcast %cst_19 : f32 to vector<16x128xf32>
    %63 = arith.subf %59, %62 : vector<16x128xf32>
    %64 = arith.cmpf one, %63, %63 : vector<16x128xf32>
    %65 = vector.broadcast %cst_19 : f32 to vector<16x128xf32>
    %66 = arith.addf %59, %65 : vector<16x128xf32>
    %67 = math.absf %63 : vector<16x128xf32>
    %cst_20 = arith.constant 0.000000e+00 : f32
    %68 = vector.broadcast %cst_20 : f32 to vector<16x128xf32>
    %69 = arith.subf %68, %67 : vector<16x128xf32>
    %70 = math.exp %69 : vector<16x128xf32>
    %71 = math.log1p %70 : vector<16x128xf32>
    %72 = arith.addf %61, %71 : vector<16x128xf32>
    %73 = arith.select %64, %66, %72 : vector<16x128xi1>, vector<16x128xf32>
    %c0_21 = arith.constant 0 : index
    %c0_22 = arith.constant 0 : index
    %74 = vector.load %arg7[%c0_21, %c0_22] : memref<16x16xf32, #tpu.memory_space<vmem>>, vector<16x16xf32>
    %cst_23 = arith.constant dense<0.000000e+00> : vector<16x128xf32>
    %75 = tpu.matmul %74, %73, %cst_23 {dimension_numbers = #tpu.dot_dimension_numbers<[1], [0], [0], [1], [0, 0, 1, 1], [], []>} : vector<16x16xf32>, vector<16x128xf32>, vector<16x128xf32> -> vector<16x128xf32>
    %c0_24 = arith.constant 0 : index
    %c0_25 = arith.constant 0 : index
    %76 = vector.load %arg8[%c0_24, %c0_25] : memref<16x1xf32, #tpu.memory_space<vmem>>, vector<16x1xf32>
    %77 = vector.broadcast %76 : vector<16x1xf32> to vector<16x128xf32>
    %78 = arith.addf %75, %77 : vector<16x128xf32>
    %c0_26 = arith.constant 0 : index
    %c0_27 = arith.constant 0 : index
    %79 = vector.load %arg11[%c0_26, %c0_27] : memref<16x16xf32, #tpu.memory_space<vmem>>, vector<16x16xf32>
    %cst_28 = arith.constant dense<0.000000e+00> : vector<16x16xf32>
    %80 = tpu.matmul %78, %54, %cst_28 {dimension_numbers = #tpu.dot_dimension_numbers<[1], [1], [0], [0], [0, 0, 1, 0], [], []>} : vector<16x128xf32>, vector<16x128xf32>, vector<16x16xf32> -> vector<16x16xf32>
    %81 = arith.addf %79, %80 : vector<16x16xf32>
    %c0_29 = arith.constant 0 : index
    %c0_30 = arith.constant 0 : index
    %82 = vector.load %arg11[%c0_29, %c0_30] : memref<16x16xf32, #tpu.memory_space<vmem>>, vector<16x16xf32>
    tpu.vector_store %arg11[%c0_29, %c0_30], %81 {strides = array<i32>} : memref<16x16xf32, #tpu.memory_space<vmem>>, vector<16x16xf32>,
    %c0_i32_31 = arith.constant 0 : i32
    %83 = arith.cmpi eq, %arg0, %c0_i32_31 : i32
    %84 = arith.extui %83 : i1 to i32
    %c0_i32_32 = arith.constant 0 : i32
    %85 = arith.cmpi ne, %84, %c0_i32_32 : i32
    scf.if %85 {
      %c0_33 = arith.constant 0 : index
      %c0_34 = arith.constant 0 : index
      %86 = vector.load %arg11[%c0_33, %c0_34] : memref<16x16xf32, #tpu.memory_space<vmem>>, vector<16x16xf32>
      %cst_35 = arith.constant dense<0.000000e+00> : vector<16x16xf32>
      %87 = tpu.matmul %86, %86, %cst_35 {dimension_numbers = #tpu.dot_dimension_numbers<[1], [1], [0], [0], [0, 0, 1, 0], [], []>} : vector<16x16xf32>, vector<16x16xf32>, vector<16x16xf32> -> vector<16x16xf32>
      %c0_36 = arith.constant 0 : index
      %c0_37 = arith.constant 0 : index
      %88 = vector.load %arg9[%c0_36, %c0_37] : memref<16x16xf32, #tpu.memory_space<vmem>>, vector<16x16xf32>
      tpu.vector_store %arg9[%c0_36, %c0_37], %87 {strides = array<i32>} : memref<16x16xf32, #tpu.memory_space<vmem>>, vector<16x16xf32>,
    } else {
    }
    return
  }
  func.func @transform_0(%arg0: i32) -> (i32, i32) {
    %c0_i32 = arith.constant 0 : i32
    %c0_i32_0 = arith.constant 0 : i32
    return %c0_i32, %arg0 : i32, i32
  }
  func.func @transform_1(%arg0: i32) -> (i32, i32) {
    %c0_i32 = arith.constant 0 : i32
    %c0_i32_0 = arith.constant 0 : i32
    %c0_i32_1 = arith.constant 0 : i32
    return %c0_i32, %c0_i32_0 : i32, i32
  }
  func.func @transform_2(%arg0: i32) -> (i32, i32) {
    %c0_i32 = arith.constant 0 : i32
    %c0_i32_0 = arith.constant 0 : i32
    %c0_i32_1 = arith.constant 0 : i32
    return %c0_i32, %c0_i32_0 : i32, i32
  }
  func.func @transform_3(%arg0: i32) -> (i32, i32) {
    %c0_i32 = arith.constant 0 : i32
    %c0_i32_0 = arith.constant 0 : i32
    %c0_i32_1 = arith.constant 0 : i32
    return %c0_i32, %c0_i32_0 : i32, i32
  }
  func.func @transform_4(%arg0: i32) -> (i32, i32) {
    %c0_i32 = arith.constant 0 : i32
    %c0_i32_0 = arith.constant 0 : i32
    %c0_i32_1 = arith.constant 0 : i32
    return %c0_i32, %c0_i32_0 : i32, i32
  }
  func.func @transform_5(%arg0: i32) -> (i32, i32) {
    %c0_i32 = arith.constant 0 : i32
    %c0_i32_0 = arith.constant 0 : i32
    %c0_i32_1 = arith.constant 0 : i32
    return %c0_i32, %c0_i32_0 : i32, i32
  }
  func.func @transform_6(%arg0: i32) -> (i32, i32) {
    %c0_i32 = arith.constant 0 : i32
    %c0_i32_0 = arith.constant 0 : i32
    %c0_i32_1 = arith.constant 0 : i32
    return %c0_i32, %c0_i32_0 : i32, i32
  }
  func.func @transform_7(%arg0: i32) -> (i32, i32) {
    %c0_i32 = arith.constant 0 : i32
    %c0_i32_0 = arith.constant 0 : i32
    %c0_i32_1 = arith.constant 0 : i32
    return %c0_i32, %c0_i32_0 : i32, i32
  }
  func.func @transform_8(%arg0: i32) -> (i32, i32) {
    %c0_i32 = arith.constant 0 : i32
    %c0_i32_0 = arith.constant 0 : i32
    %c0_i32_1 = arith.constant 0 : i32
    return %c0_i32, %c0_i32_0 : i32, i32
  }
}

</mosaic_0001>

<bundles_post_ra>
// kernel: tpu_custom_call.1
= control target key start
LH: loop header
LB: loop body
LE: loop exit
PB: predicated region body
PF: predicated region fallthrough
CT: control target
= control target key end

     0   :  { %13 = vsyncpa [#allocation5], 0  ;;  %s1383_s0 = inlined_call_operand.vmem [shape: s32[1,128], index: 0, kind: input, shape index: {}]   ;;  %s1384_s1 = inlined_call_operand.hbm [shape: f32[8,32], index: 1, kind: input, shape index: {}]   ;;  %s1385_s2 = inlined_call_operand.vmem [shape: f32[16,32], index: 2, kind: input, shape index: {}]   ;;  %s1386_s3 = inlined_call_operand.vmem [shape: f32[16,1], index: 3, kind: input, shape index: {}]   ;;  %s1387_s4 = inlined_call_operand.vmem [shape: f32[16,16], index: 4, kind: input, shape index: {}]   ;;  %s1388_s5 = inlined_call_operand.vmem [shape: f32[16,1], index: 5, kind: input, shape index: {}]   ;;  %s1389_s6 = inlined_call_operand.vmem [shape: f32[16,16], index: 6, kind: input, shape index: {}]   ;;  %s1390_s7 = inlined_call_operand.vmem [shape: f32[16,1], index: 7, kind: input, shape index: {}]   ;;  %s1391_s8 = inlined_call_operand.hbm [shape: f32[16,16], index: 8, kind: output, shape index: {}]  }
   0x1   :  { %14 = vsyncpa [#allocation6], 0  ;;  %s1116_s27 = smov [#allocation4]  }
   0x2   :  { %s23_s28 = sshll.u32 %s1116_s27, 4  ;;  %s24_s28 = int_to_ptr.vmem [resolvable:$true] %s23_s28 }
   0x3   :  { %s1080_s29 = scalar_lea.vmem %s24_s28, 128  ;;  %p1085_p1 = scmp.lt.s32.totalorder %s24_s28, %s24_s28 }
   0x4   :  { %p1081_p0 = scmp.ne.s32.totalorder %s24_s28, %s1080_s29  ;;  %p1086_p2 = scmp.lt.s32.totalorder %s1080_s29, %s1080_s29 }
   0x6   :  { %p1087_p3 = por %p1086_p2, %p1085_p1 }
   0x8   :  { %p1088_p4 = pnand %p1087_p3, %p1081_p0 }
   0xa   :  { %1091 = shalt.err (!%p1088_p4)
}
   0xb   :  { %26 = dma.hbm_to_vmem [thread:$0]  %s1384_s1, 128, %s24_s28, [#allocation5]  }
   0xc   :  { %1112 = dma.done.wait [#allocation5], 128  }
   0xd   :  { %1113 = vsyncadd [#allocation5], 4294967168  ;;  %v1117_v0 = vmov 0   ;;  %vm62_vm0 = vcmask 261120   ;;  %v49_v1 = vld [vmem:[#allocation4] sm:$0xff]  ;;  %v47_v2 = vld [vmem:[%s1385_s2] sm:$0xff]  ;;  %v198_v7 = vlaneseq }
   0xe   :  { %1041 = vset.pattern.permute.xlu0 %v1117_v0  ;;  %1042 = vset.pattern.permute.xlu1 %v1117_v0  ;;  %v50_v3 = vld [vmem:[%s1386_s3] sm:$0xff]  ;;  %v48_v4 = vld [vmem:[%s1385_s2 + $0x8] sm:$0xff]  ;;  %vm194_vm1 = vcmask 130048   ;;  %v1118_v10 = vmov 0.0   ;;  %vm1119_vm3 = vmmov 0   ;;  %vm219_vm4 = vcmask 1043456  }
   0xf   :  { %981 = vmatprep.subr.msk.mxu1 %vm62_vm0, %v49_v1  ;;  %983 = vmatprep.mubr.msk.f32.mxu1 %vm62_vm0, %v47_v2  ;;  %v51_v5 = vld [vmem:[%s1386_s3 + $0x8] sm:$0xff]  ;;  %v648_v6 = vld [vmem:[%s1390_s7] sm:$0xff]  ;;  %v1198_v9 = vshrl.u32 %v198_v7, 7  ;;  %195 = vst.msk [vmem:[#allocation3] sm:$0xff] %vm194_vm1, %v1118_v10  ;;  %196 = vst.msk [vmem:[#allocation3 + $0x8] sm:$0xff] %vm194_vm1, %v1118_v10  ;;  %vm191_vm8 = vcmask 60416  }
  0x10   :  { %982 = vmatpush3.xpose.msk.msra.mxu1 %vm62_vm0, %v49_v1  ;;  %54 = vperm.xlu0 %1041, %v50_v3   ;;  %v932_v8 = vld [vmem:[%s1383_s0] ss:$0 sm:$0xff]  ;;  %vm215_vm10 = vcmask 64512   ;;  %v1204_v53 = vand.u32 127, %v198_v7  ;;  %v517_v55 = vld [vmem:[%s1388_s5 + $0x8] sm:$0xff] }
  0x11   :  { %986 = vmatprep.subr.bf16.mxu1 %v1118_v10  ;;  %vm204_vm2 = vcmp.eq.s32.totalorder %v1198_v9, %v932_v8  ;;  %v514_v54 = vld [vmem:[%s1387_s4] sm:$0xff]  ;;  %525 = vperm.xlu1 %1042, %v517_v55   ;;  %v281_v58 = vsub.s32 0, %v1198_v9  ;;  %v649_v62 = vld [vmem:[%s1390_s7 + $0x8] sm:$0xff] }
  0x12   :  { %v933_v11 = vsel %vm204_vm2, 1.0, %v1118_v10  ;;  %996 = vmatprep.mubr.msk.f32.mxu0 %vm194_vm1, %v514_v54  ;;  %vm269_vm11 = vcmp.lt.s32.totalorder %v1204_v53, 16  ;;  %v516_v56 = vld [vmem:[%s1388_s5] sm:$0xff] }
  0x13   :  { %984 = vmatmul.mubr.msk.f32.vlgmr.msra.gmra.mxu1 %vm62_vm0, %v48_v4  ;;  %v207_v12 = vpack.c.bf16 %v933_v11, %v933_v11 }
  0x14   :  { %59 = vperm.xlu0 %1041, %v51_v5   ;;  %988 = vmatprep.mubr.msk.bf16.mxu1 %vm1119_vm3, %v1118_v10 }
  0x15   :  { %v221_v13 = vsel %vm219_vm4, %v207_v12, 0  ;;  %520 = vperm.xlu1 %1042, %v516_v56  }
  0x16   :  { %987 = vmatpush3.bf16.msra.mxu1 %v221_v13 }
  0x18   :  { %652 = vperm.xlu0 %1041, %v648_v6  }
  0x19   :  { %657 = vperm.xlu1 %1042, %v649_v62  }
  0x8b   :  { %v55_v14 = vpop.permute.xlu0 %54 }
  0x8f   :  { %v60_v15 = vpop.permute.xlu0 %59 }
  0xd3   :  { %v985_v16 = vpop.f32.mrf.mxu1 }
  0xd4   :  { %v144_v17 = vadd.f32 %v985_v16, %v60_v15 }
  0xd5   :  { %v138_v18 = vpop.f32.mrf.mxu1 }
  0xd6   :  { %v154_v19 = vand.u32 2147483647, %v144_v17  ;;  %v139_v20 = vadd.f32 %v138_v18, %v55_v14  ;;  %v148_v40 = vmax.f32 %v144_v17, 0.0  ;;  %vm150_vm7 = vcmp.ne.f32.partialorder %v144_v17, %v144_v17 }
  0xd8   :  { %v156_v21 = vsub.f32 0.0, %v154_v19  ;;  %v153_v22 = vand.u32 2147483647, %v139_v20  ;;  %v147_v45 = vmax.f32 %v139_v20, 0.0  ;;  %vm149_vm9 = vcmp.ne.f32.partialorder %v139_v20, %v139_v20 }
  0xda   :  { %v159_v23 = vmul.f32 1.442695, %v156_v21  ;;  %v155_v24 = vsub.f32 0.0, %v153_v22 }
  0xdc   :  { %1044 = vpow2.f32 %v159_v23  ;;  %v157_v25 = vmul.f32 1.442695, %v155_v24 }
  0xde   :  { %1046 = vpow2.f32 %v157_v25 }
  0xe9   :  { %v1045_v26 = vpop.eup %1044 }
  0xea   :  { %v170_v27 = vadd.f32 1.0, %v1045_v26  ;;  %v173_v30 = vmul.f32 -0.5, %v1045_v26  ;;  %v176_v33 = vand.u32 2147483647, %v1045_v26 }
  0xeb   :  { %v1047_v28 = vpop.eup %1046 }
  0xec   :  { %1048 = vlog2.f32 %v170_v27  ;;  %v161_v29 = vadd.f32 1.0, %v1047_v28  ;;  %v164_v31 = vmul.f32 -0.5, %v1047_v28  ;;  %v174_v32 = vadd.f32 1.0, %v173_v30 }
  0xed   :  { %v167_v36 = vand.u32 2147483647, %v1047_v28  ;;  %vm177_vm5 = vcmp.lt.f32.partialorder %v176_v33, 0.0004427343  ;;  %v1120_v33 = vmov 2102212464  }
  0xee   :  { %1050 = vlog2.f32 %v161_v29  ;;  %v165_v34 = vadd.f32 1.0, %v164_v31  ;;  %v175_v38 = vmul.f32 %v1045_v26, %v174_v32 }
  0xef   :  { %vm168_vm6 = vcmp.lt.f32.partialorder %v167_v36, 0.0004427343 }
  0xf0   :  { %v166_v43 = vmul.f32 %v1047_v28, %v165_v34 }
  0xf9   :  { %v1049_v35 = vpop.eup %1048 }
  0xfa   :  { %v172_v37 = vmul.f32 0.6931472, %v1049_v35  ;;  %v1121_v35 = vmov 920167782  }
  0xfb   :  { %v1051_v39 = vpop.eup %1050 }
  0xfc   :  { %v178_v41 = vsel %vm177_vm5, %v175_v38, %v172_v37  ;;  %v163_v42 = vmul.f32 0.6931472, %v1051_v39  ;;  %v1122_v39 = vmov 1326507024  }
  0xfd   :  { %v180_v44 = vadd.f32 %v178_v41, %v148_v40 }
  0xfe   :  { %v169_v46 = vsel %vm168_vm6, %v166_v43, %v163_v42  ;;  %v1123_v43 = vmov 683565275  }
  0xff   :  { %v182_v47 = vsel %vm150_vm7, %v144_v17, %v180_v44  ;;  %v179_v48 = vadd.f32 %v169_v46, %v147_v45  ;;  %v1124_v45 = vmov 2475754826  }
 0x100   :  { %v959_v49 = vpack.c.bf16 %v182_v47, %v182_v47  ;;  %v1125_v47 = vmov 2131351028  }
 0x101   :  { %v181_v50 = vsel %vm149_vm9, %v139_v20, %v179_v48 }
 0x102   :  { %193 = vst.msk [vmem:[#allocation2 + $0x4] sm:$0xf] %vm191_vm8, %v959_v49  ;;  %v958_v51 = vpack.c.bf16 %v181_v50, %v181_v50 }
 0x104   :  { %192 = vst.msk [vmem:[#allocation2] sm:$0xf] %vm191_vm8, %v958_v51 }
 0x10b   :  { %v1043_v52 = vld [vmem:[#allocation2] sm:$0xff]  }
 0x10c   :  { %989 = vmatmul.mubr.msk.bf16.vlgmr.msra.gmra.mxu1 %vm215_vm10, %v1043_v52 }
 0x1cc   :  { %v257_v57 = vpop.f32.mrf.mxu1 }
 0x1cd   :  { %v272_v59 = vsel %vm269_vm11, %v257_v57, 1.0 }
 0x1ce   :  { %vm275_vm12 = vcmp.gt.f32.partialorder %v272_v59, 6.0  ;;  %1052 = vrcp.f32 %v272_v59  ;;  %v990_v60 = vpop.f32.mrf.mxu1  ;;  %vm274_vm13 = vcmp.lt.f32.partialorder %v272_v59, 0.3 }
 0x1cf   :  { %v504_v61 = vsel %vm275_vm12, 1, %v1117_v0  ;;  %v278_v4 = vsel %vm274_vm13, 1, %v1117_v0 }
 0x1d0   :  { %v260_v63 = vpop.f32.mrf.mxu1  ;;  %v1224_v1 = vrot.slane %v504_v61, %v281_v58  ;;  %v282_v5 = vrot.slane %v278_v4, %v281_v58 }
 0x1d1   :  { %v273_v2 = vsel %vm269_vm11, %v260_v63, 1.0 }
 0x1d2   :  { %1054 = vrcp.f32 %v273_v2  ;;  %v991_v3 = vpop.f32.mrf.mxu1  ;;  %vm283_vm14 = vcmp.eq.s32.totalorder %v282_v5, 1 }
 0x1db   :  { %v1053_v6 = vpop.eup %1052 }
 0x1dc   :  { %v284_v7 = vsel %vm283_vm14, %v1053_v6, %v272_v59  ;;  %v1229_v8 = vsel %vm283_vm14, %v272_v59, %v1053_v6 }
 0x1dd   :  { %v936_v9 = vadd.f32 -0.3, %v284_v7 }
 0x1df   :  { %v1055_v10 = vpop.eup %1054  ;;  %v1231_v11 = vmul.f32 0.5511566, %v936_v9 }
 0x1e0   :  { %v285_v12 = vsel %vm283_vm14, %v1055_v10, %v273_v2  ;;  %v1233_v13 = vsel %vm283_vm14, %v273_v2, %v1055_v10 }
 0x1e1   :  { %v295_v14 = vand.u32 2139095040, %v1231_v11  ;;  %v937_v15 = vadd.f32 -0.3, %v285_v12  ;;  %v292_v20 = vand.u32 2147483647, %v1231_v11 }
 0x1e3   :  { %v296_v16 = vshrl.u32 %v295_v14, 23  ;;  %v1236_v17 = vmul.f32 0.5511566, %v937_v15  ;;  %v1245_v25 = vand.u32 8388607, %v292_v20 }
 0x1e5   :  { %v938_v0 = vadd.s32 4294967169, %v296_v16  ;;  %v395_v18 = vand.u32 2147483647, %v1236_v17  ;;  %v398_v19 = vand.u32 2139095040, %v1236_v17  ;;  %v300_v32 = vor.u32 8388608, %v1245_v25 }
 0x1e7   :  { %v302_v21 = vadd.s32 1, %v938_v0  ;;  %v399_v22 = vshrl.u32 %v398_v19, 23  ;;  %v402_v23 = vand.u32 8388607, %v395_v18 }
 0x1e9   :  { %vm303_vm15 = vcmp.gt.s32.totalorder %v302_v21, 0  ;;  %v942_v24 = vadd.s32 4294967169, %v399_v22  ;;  %v403_v27 = vor.u32 8388608, %v402_v23 }
 0x1ea   :  { %v304_v26 = vsel %vm303_vm15, %v302_v21, 0  ;;  %vm397_vm15 = vcmp.lt.s32.totalorder %v1236_v17, 0 }
 0x1eb   :  { %v1247_v28 = vshrl.u32 %v304_v26, 5  ;;  %v306_v29 = vand.u32 31, %v304_v26  ;;  %v405_v30 = vadd.s32 1, %v942_v24  ;;  %v1252_v37 = vshll.u32 %v403_v27, 8 }
 0x1ed   :  { %v1249_v31 = vsub.s32 32, %v306_v29  ;;  %v318_v34 = vshll.u32 %v1120_v33, %v306_v29  ;;  %v321_v36 = vshll.u32 %v1121_v35, %v306_v29  ;;  %vm406_vm0 = vcmp.gt.s32.totalorder %v405_v30, 0 }
 0x1ee   :  { %vm327_vm2 = vcmp.lt.s32.totalorder %v1247_v28, 4  ;;  %v407_v41 = vsel %vm406_vm0, %v405_v30, 0  ;;  %v309_v44 = vshll.u32 %v1123_v43, %v306_v29  ;;  %v312_v46 = vshll.u32 %v1124_v45, %v306_v29 }
 0x1ef   :  { %v319_v38 = vshrl.u32 %v1121_v35, %v1249_v31  ;;  %v322_v40 = vshrl.u32 %v1122_v39, %v1249_v31  ;;  %v409_v42 = vand.u32 31, %v407_v41  ;;  %v315_v48 = vshll.u32 %v1125_v47, %v306_v29 }
 0x1f0   :  { %v408_v50 = vshrl.u32 %v407_v41, 5  ;;  %v310_v51 = vshrl.u32 %v1124_v45, %v1249_v31  ;;  %v313_v52 = vshrl.u32 %v1125_v47, %v1249_v31  ;;  %v316_v57 = vshrl.u32 %v1120_v33, %v1249_v31 }
 0x1f1   :  { %v320_v49 = vor.u32 %v319_v38, %v318_v34  ;;  %v323_v54 = vor.u32 %v322_v40, %v321_v36  ;;  %v410_v55 = vsub.s32 32, %v409_v42  ;;  %v412_v56 = vshll.u32 %v1123_v43, %v409_v42 }
 0x1f2   :  { %v415_v59 = vshll.u32 %v1124_v45, %v409_v42  ;;  %v418_v60 = vshll.u32 %v1125_v47, %v409_v42  ;;  %v421_v61 = vshll.u32 %v1120_v33, %v409_v42  ;;  %v424_v3 = vshll.u32 %v1121_v35, %v409_v42 }
 0x1f3   :  { %v333_v58 = vsel %vm327_vm2, %v320_v49, 920167782  ;;  %v413_v62 = vshrl.u32 %v1124_v45, %v410_v55  ;;  %v416_v63 = vshrl.u32 %v1125_v47, %v410_v55  ;;  %v419_v2 = vshrl.u32 %v1120_v33, %v410_v55 }
 0x1f4   :  { %vm324_vm3 = vcmp.lt.s32.totalorder %v1247_v28, 1  ;;  %v411_v4 = vshrl.u32 %v1123_v43, %v410_v55  ;;  %v422_v5 = vshrl.u32 %v1121_v35, %v410_v55  ;;  %v425_v6 = vshrl.u32 %v1122_v39, %v410_v55 }
 0x1f5   :  { %vm427_vm4 = vcmp.lt.s32.totalorder %v408_v50, 1  ;;  %v414_v7 = vor.u32 %v413_v62, %v412_v56  ;;  %v417_v9 = vor.u32 %v416_v63, %v415_v59  ;;  %v420_v10 = vor.u32 %v419_v2, %v418_v60 }
 0x1f6   :  { %vm429_vm5 = vcmp.lt.s32.totalorder %v408_v50, 3  ;;  %v423_v12 = vor.u32 %v422_v5, %v421_v61  ;;  %v426_v14 = vor.u32 %v425_v6, %v424_v3  ;;  %vm430_vm6 = vcmp.lt.s32.totalorder %v408_v50, 4 }
 0x1f7   :  { %v311_v15 = vor.u32 %v310_v51, %v309_v44  ;;  %v431_v16 = vsel %vm427_vm4, %v411_v4, %v414_v7  ;;  %v432_v0 = vsel %vm430_vm6, %v420_v10, 2102212464  ;;  %v435_v19 = vsel %vm427_vm4, %v414_v7, %v417_v9 }
 0x1f8   :  { %v439_v21 = vsel %vm427_vm4, %v417_v9, %v420_v10  ;;  %v433_v22 = vsel %vm429_vm5, %v417_v9, %v432_v0  ;;  %v436_v23 = vsel %vm430_vm6, %v423_v12, 920167782  ;;  %v440_v24 = vsel %vm430_vm6, %v426_v14, 1326507024 }
 0x1f9   :  { %v314_v26 = vor.u32 %v313_v52, %v312_v46  ;;  %vm428_vm7 = vcmp.lt.s32.totalorder %v408_v50, 2  ;;  %v437_v27 = vsel %vm429_vm5, %v420_v10, %v436_v23  ;;  %v441_v29 = vsel %vm429_vm5, %v423_v12, %v440_v24 }
 0x1fa   :  { %v317_v30 = vor.u32 %v316_v57, %v315_v48  ;;  %v337_v33 = vsel %vm327_vm2, %v323_v54, 1326507024  ;;  %v434_v34 = vsel %vm428_vm7, %v431_v16, %v433_v22  ;;  %v438_v35 = vsel %vm428_vm7, %v435_v19, %v437_v27 }
 0x1fb   :  { %v442_v36 = vsel %vm428_vm7, %v439_v21, %v441_v29  ;;  %v1270_v40 = vmul.u32.u64.low %v1252_v37, %v438_v35  ;;  %v1271_v41 = vmul.u32.u64.high %v1252_v37, %v438_v35, %v1270_v40  ;;  %v308_v42 = vshrl.u32 %v1123_v43, %v1249_v31 }
 0x1fc   :  { %v1266_v38 = vmul.u32.u64.low %v1252_v37, %v442_v36  ;;  %v1267_v39 = vmul.u32.u64.high %v1252_v37, %v442_v36, %v1266_v38  ;;  %vm326_vm8 = vcmp.lt.s32.totalorder %v1247_v28, 3  ;;  %v329_v44 = vsel %vm327_vm2, %v317_v30, 2102212464 }
 0x1fd   :  { %v332_v45 = vsel %vm324_vm3, %v311_v15, %v314_v26  ;;  %vm325_vm9 = vcmp.lt.s32.totalorder %v1247_v28, 2  ;;  %v334_v46 = vsel %vm326_vm8, %v317_v30, %v333_v58  ;;  %v336_v47 = vsel %vm324_vm3, %v314_v26, %v317_v30 }
 0x1fe   :  { %v338_v48 = vsel %vm326_vm8, %v320_v49, %v337_v33  ;;  %v450_v31 = vmul.u32 %v1252_v37, %v434_v34  ;;  %v335_v43 = vsel %vm325_vm9, %v332_v45, %v334_v46  ;;  %v340_v51 = vshll.u32 %v300_v32, 8 }
 0x1ff   :  { %v339_v50 = vsel %vm325_vm9, %v336_v47, %v338_v48  ;;  %vm452_vm10 = vc.u32 %v1267_v39, %v1270_v40  ;;  %v453_v52 = vadd.s32 1, %v1271_v41  ;;  %v328_v54 = vsel %vm324_vm3, %v308_v42, %v311_v15 }
 0x200   :  { %v330_v49 = vsel %vm326_vm8, %v314_v26, %v329_v44  ;;  %v1299_v37 = vmul.u32.u64.low %v340_v51, %v339_v50  ;;  %v1300_v55 = vmul.u32.u64.high %v340_v51, %v339_v50, %v1299_v37  ;;  %v451_v21 = vadd.s32 %v1270_v40, %v1267_v39 }
 0x201   :  { %v1302_v56 = vmul.u32.u64.low %v340_v51, %v335_v43  ;;  %v1303_v57 = vmul.u32.u64.high %v340_v51, %v335_v43, %v1302_v56  ;;  %v454_v58 = vsel %vm452_vm10, %v453_v52, %v1271_v41  ;;  %v331_v32 = vsel %vm325_vm9, %v328_v54, %v330_v49 }
 0x202   :  { %v455_v25 = vadd.s32 %v454_v58, %v450_v31  ;;  %v347_v61 = vmul.u32 %v340_v51, %v331_v32  ;;  %vm1316_vm0 = vcmp.le.f32.partialorder %v395_v18, 0.7853982  ;;  %vm294_vm2 = vcmp.lt.s32.totalorder %v1231_v11, 0 }
 0x203   :  { %vm349_vm12 = vc.u32 %v1300_v55, %v1302_v56  ;;  %v350_v60 = vadd.s32 1, %v1303_v57  ;;  %v348_v35 = vadd.s32 %v1302_v56, %v1300_v55  ;;  %vm1326_vm3 = vcmp.le.f32.partialorder %v292_v20, 0.7853982 }
 0x204   :  { %v456_v59 = vadd.s32 536870912, %v455_v25  ;;  %vm487_vm7 = vweird.f32 %v1236_v17 }
 0x205   :  { %v351_v63 = vsel %vm349_vm12, %v350_v60, %v1303_v57  ;;  %vm384_vm12 = vweird.f32 %v1231_v11 }
 0x206   :  { %v457_v62 = vshrl.u32 %v456_v59, 30  ;;  %v352_v2 = vadd.s32 %v351_v63, %v347_v61 }
 0x208   :  { %v458_v3 = vshll.u32 %v457_v62, 30  ;;  %v353_v4 = vadd.s32 536870912, %v352_v2  ;;  %v481_v55 = vsub.s32 4, %v457_v62 }
 0x20a   :  { %v459_v5 = vsub.s32 %v455_v25, %v458_v3  ;;  %v354_v6 = vshrl.u32 %v353_v4, 30  ;;  %v482_v25 = vsel %vm397_vm15, %v481_v55, %v457_v62 }
 0x20b   :  { %v484_v59 = vsel %vm1316_vm0, 0, %v482_v25 }
 0x20c   :  { %v461_v7 = vsub.s32 0, %v459_v5  ;;  %v355_v9 = vshll.u32 %v354_v6, 30  ;;  %v378_v32 = vsub.s32 4, %v354_v6  ;;  %v488_v61 = vand.u32 3, %v484_v59 }
 0x20e   :  { %v943_v10 = vmin.u32 %v461_v7, %v459_v5  ;;  %v356_v12 = vsub.s32 %v352_v2, %v355_v9  ;;  %v379_v60 = vsel %vm294_vm2, %v378_v32, %v354_v6  ;;  %vm493_vm4 = vcmp.eq.s32.totalorder %v488_v61, 2 }
 0x20f   :  { %v381_v20 = vsel %vm1326_vm3, 0, %v379_v60  ;;  %vm490_vm5 = vcmp.eq.s32.totalorder %v488_v61, 0  ;;  %vm489_vm6 = vcmp.lt.s32.totalorder %v488_v61, 2 }
 0x210   :  { %v463_v28 = vclz %v943_v10  ;;  %v358_v14 = vsub.s32 0, %v356_v12  ;;  %v385_v7 = vand.u32 3, %v381_v20 }
 0x212   :  { %v944_v15 = vadd.s32 4294967294, %v463_v28  ;;  %v939_v16 = vmin.u32 %v358_v14, %v356_v12  ;;  %vm390_vm8 = vcmp.eq.s32.totalorder %v385_v7, 2  ;;  %vm387_vm9 = vcmp.eq.s32.totalorder %v385_v7, 0 }
 0x213   :  { %vm386_vm10 = vcmp.lt.s32.totalorder %v385_v7, 2 }
 0x214   :  { %vm945_vm13 = vcmp.lt.s32.totalorder %v944_v15, 0  ;;  %v360_v19 = vclz %v939_v16 }
 0x215   :  { %v466_v0 = vsel %vm945_vm13, 0, %v944_v15  ;;  %vm509_vm13 = vcmp.eq.s32.totalorder %v1224_v1, 1  ;;  %v515_v1 = vld [vmem:[%s1387_s4 + $0x8] sm:$0xff] }
 0x216   :  { %v467_v22 = vsub.s32 32, %v466_v0  ;;  %v471_v23 = vsub.s32 4294967266, %v466_v0  ;;  %v940_v24 = vadd.s32 4294967294, %v360_v19  ;;  %v468_v26 = vshll.u32 %v459_v5, %v466_v0 }
 0x218   :  { %v469_v27 = vshrl.u32 %v451_v21, %v467_v22  ;;  %v472_v29 = vadd.s32 127, %v471_v23  ;;  %vm941_vm14 = vcmp.lt.s32.totalorder %v940_v24, 0 }
 0x219   :  { %v363_v34 = vsel %vm941_vm14, 0, %v940_v24 }
 0x21a   :  { %v470_v30 = vor.u32 %v469_v27, %v468_v26  ;;  %v473_v33 = vshll.u32 %v472_v29, 23  ;;  %v364_v36 = vsub.s32 32, %v363_v34  ;;  %v368_v38 = vsub.s32 4294967266, %v363_v34  ;;  %v526_v27 = vpop.permute.xlu1 %525 }
 0x21b   :  { %v365_v42 = vshll.u32 %v356_v12, %v363_v34 }
 0x21c   :  { %v474_v41 = vor.u32 4788187, %v473_v33  ;;  %v366_v44 = vshrl.u32 %v348_v35, %v364_v36  ;;  %v369_v45 = vadd.s32 127, %v368_v38  ;;  %v477_v39 = vcvt.s32.f32 %v470_v30 }
 0x21e   :  { %v475_v46 = vand.u32 2147483647, %v474_v41  ;;  %v367_v40 = vor.u32 %v366_v44, %v365_v42  ;;  %v370_v47 = vshll.u32 %v369_v45, 23  ;;  %v521_v33 = vpop.permute.xlu1 %520 }
 0x220   :  { %v478_v48 = vmul.f32 %v477_v39, %v475_v46  ;;  %v371_v31 = vor.u32 4788187, %v370_v47  ;;  %v374_v51 = vcvt.s32.f32 %v367_v40 }
 0x222   :  { %v479_v43 = vxor.u32 2147483648, %v478_v48  ;;  %v372_v50 = vand.u32 2147483647, %v371_v31 }
 0x224   :  { %v480_v54 = vsel %vm397_vm15, %v479_v43, %v478_v48  ;;  %v375_v37 = vmul.f32 %v374_v51, %v372_v50 }
 0x225   :  { %v483_v49 = vsel %vm1316_vm0, %v1236_v17, %v480_v54 }
 0x226   :  { %1056 = vcosq.f32 %v483_v49  ;;  %v376_v56 = vxor.u32 2147483648, %v375_v37 }
 0x227   :  { %1058 = vsinq.f32 %v483_v49 }
 0x228   :  { %v377_v18 = vsel %vm294_vm2, %v376_v56, %v375_v37 }
 0x229   :  { %v380_v58 = vsel %vm1326_vm3, %v1231_v11, %v377_v18 }
 0x22a   :  { %1060 = vcosq.f32 %v380_v58 }
 0x22b   :  { %1062 = vsinq.f32 %v380_v58 }
 0x233   :  { %v1057_v63 = vpop.eup %1056 }
 0x234   :  { %v1059_v2 = vpop.eup %1058  ;;  %v494_v3 = vxor.u32 2147483648, %v1057_v63 }
 0x235   :  { %v491_v4 = vxor.u32 2147483648, %v1059_v2 }
 0x236   :  { %v495_v5 = vsel %vm493_vm4, %v494_v3, %v1059_v2  ;;  %v653_v2 = vpop.permute.xlu0 %652 }
 0x237   :  { %v492_v62 = vsel %vm490_vm5, %v1057_v63, %v491_v4  ;;  %v1061_v9 = vpop.eup %1060  ;;  %v647_v63 = vld [vmem:[%s1389_s6 + $0x8] sm:$0xff]  ;;  %v658_v4 = vpop.permute.xlu1 %657 }
 0x238   :  { %v496_v10 = vsel %vm489_vm6, %v492_v62, %v495_v5  ;;  %v1063_v12 = vpop.eup %1062  ;;  %v391_v28 = vxor.u32 2147483648, %v1061_v9  ;;  %v742_v62 = vld [vmem:[#allocation3 + $0x8] sm:$0xff] }
 0x239   :  { %v497_v6 = vsel %vm487_vm7, nan, %v496_v10  ;;  %v388_v15 = vxor.u32 2147483648, %v1063_v12  ;;  %v741_v10 = vld [vmem:[#allocation3] sm:$0xff] }
 0x23a   :  { %v499_v14 = vmul.f32 0.5, %v497_v6  ;;  %v392_v16 = vsel %vm390_vm8, %v391_v28, %v1063_v12 }
 0x23b   :  { %v389_v19 = vsel %vm387_vm9, %v1061_v9, %v388_v15 }
 0x23c   :  { %v501_v0 = vadd.f32 0.5, %v499_v14  ;;  %v393_v21 = vsel %vm386_vm10, %v389_v19, %v392_v16 }
 0x23d   :  { %v394_v23 = vsel %vm384_vm12, nan, %v393_v21 }
 0x23e   :  { %v503_v22 = vmul.f32 %v501_v0, %v1233_v13  ;;  %v498_v17 = vmul.f32 0.5, %v394_v23 }
 0x240   :  { %v511_v24 = vsel %vm509_vm13, 0.0, %v503_v22  ;;  %v500_v26 = vadd.f32 0.5, %v498_v17 }
 0x241   :  { %992 = vmatprep.subr.msk.mxu0 %vm269_vm11, %v511_v24  ;;  %1006 = vmatprep.subr.msk.mxu1 %vm269_vm11, %v511_v24 }
 0x242   :  { %993 = vmatpush3.msk.msra.mxu0 %vm269_vm11, %v511_v24  ;;  %1007 = vmatpush3.xpose.msk.msra.mxu1 %vm269_vm11, %v511_v24  ;;  %v502_v11 = vmul.f32 %v500_v26, %v1229_v8  ;;  %v646_v8 = vld [vmem:[%s1389_s6] sm:$0xff]  ;;  %s1126_s6 = smov [#allocation7]  }
 0x243   :  { %s915_s29 = sshll.u32 %s1126_s6, 4  ;;  %s916_s29 = int_to_ptr.vmem [resolvable:$true] %s915_s29 }
 0x244   :  { %v510_v13 = vsel %vm509_vm13, 0.0, %v502_v11  ;;  %s1092_s30 = scalar_lea.vmem %s916_s29, 256  ;;  %p1097_p6 = scmp.lt.s32.totalorder %s916_s29, %s916_s29 }
 0x245   :  { %994 = vmatprep.subr.msk.mxu0 %vm269_vm11, %v510_v13  ;;  %1008 = vmatprep.subr.msk.mxu1 %vm269_vm11, %v510_v13  ;;  %p1093_p5 = scmp.ne.s32.totalorder %s916_s29, %s1092_s30  ;;  %p1098_p7 = scmp.lt.s32.totalorder %s1092_s30, %s1092_s30 }
 0x246   :  { %995 = vmatpush3.msk.msra.mxu0 %vm269_vm11, %v510_v13  ;;  %1009 = vmatpush3.xpose.msk.msra.mxu1 %vm269_vm11, %v510_v13 }
 0x247   :  { %997 = vmatmul.mubr.msk.f32.vlgmr.msra.gmra.mxu0 %vm194_vm1, %v515_v1  ;;  %p1099_p8 = por %p1098_p7, %p1097_p6 }
 0x248   :  { %1003 = vmatprep.mubr.msk.f32.mxu0 %vm194_vm1, %v646_v8 }
 0x249   :  { %p1100_p9 = pnand %p1099_p8, %p1093_p5 }
 0x307   :  { %v998_v29 = vpop.f32.mrf.mxu0 }
 0x308   :  { %v607_v30 = vadd.f32 %v998_v29, %v526_v27 }
 0x309   :  { %v601_v34 = vpop.f32.mrf.mxu0 }
 0x30a   :  { %v617_v35 = vand.u32 2147483647, %v607_v30  ;;  %v602_v36 = vadd.f32 %v601_v34, %v521_v33  ;;  %v611_v55 = vmax.f32 %v607_v30, 0.0  ;;  %vm613_vm15 = vcmp.ne.f32.partialorder %v607_v30, %v607_v30 }
 0x30c   :  { %v619_v38 = vsub.f32 0.0, %v617_v35  ;;  %v616_v41 = vand.u32 2147483647, %v602_v36  ;;  %v610_v25 = vmax.f32 %v602_v36, 0.0  ;;  %vm612_vm0 = vcmp.ne.f32.partialorder %v602_v36, %v602_v36 }
 0x30e   :  { %v622_v42 = vmul.f32 1.442695, %v619_v38  ;;  %v618_v53 = vsub.f32 0.0, %v616_v41 }
 0x310   :  { %1064 = vpow2.f32 %v622_v42  ;;  %v620_v44 = vmul.f32 1.442695, %v618_v53 }
 0x312   :  { %1066 = vpow2.f32 %v620_v44 }
 0x31d   :  { %v1065_v45 = vpop.eup %1064 }
 0x31e   :  { %v633_v46 = vadd.f32 1.0, %v1065_v45  ;;  %v636_v47 = vmul.f32 -0.5, %v1065_v45  ;;  %v639_v43 = vand.u32 2147483647, %v1065_v45 }
 0x31f   :  { %v1067_v39 = vpop.eup %1066 }
 0x320   :  { %1068 = vlog2.f32 %v633_v46  ;;  %v624_v40 = vadd.f32 1.0, %v1067_v39  ;;  %v627_v48 = vmul.f32 -0.5, %v1067_v39  ;;  %v637_v31 = vadd.f32 1.0, %v636_v47 }
 0x321   :  { %v630_v52 = vand.u32 2147483647, %v1067_v39  ;;  %vm640_vm11 = vcmp.lt.f32.partialorder %v639_v43, 0.0004427343 }
 0x322   :  { %1070 = vlog2.f32 %v624_v40  ;;  %v628_v50 = vadd.f32 1.0, %v627_v48  ;;  %v638_v49 = vmul.f32 %v1065_v45, %v637_v31 }
 0x323   :  { %vm631_vm14 = vcmp.lt.f32.partialorder %v630_v52, 0.0004427343 }
 0x324   :  { %v629_v18 = vmul.f32 %v1067_v39, %v628_v50 }
 0x32d   :  { %v1069_v51 = vpop.eup %1068 }
 0x32e   :  { %v635_v54 = vmul.f32 0.6931472, %v1069_v51 }
 0x32f   :  { %v1071_v37 = vpop.eup %1070 }
 0x330   :  { %v641_v56 = vsel %vm640_vm11, %v638_v49, %v635_v54  ;;  %v626_v57 = vmul.f32 0.6931472, %v1071_v37 }
 0x331   :  { %v643_v58 = vadd.f32 %v641_v56, %v611_v55 }
 0x332   :  { %v632_v32 = vsel %vm631_vm14, %v629_v18, %v626_v57 }
 0x333   :  { %v645_v59 = vsel %vm613_vm15, %v607_v30, %v643_v58  ;;  %v642_v60 = vadd.f32 %v632_v32, %v610_v25 }
 0x334   :  { %999 = vmatprep.subr.mxu0 %v645_v59 }
 0x335   :  { %1000 = vmatpush3.msra.mxu0 %v645_v59  ;;  %v644_v61 = vsel %vm612_vm0, %v602_v36, %v642_v60 }
 0x336   :  { %1001 = vmatprep.subr.mxu0 %v644_v61 }
 0x337   :  { %1002 = vmatpush3.msra.mxu0 %v644_v61 }
 0x338   :  { %1004 = vmatmul.mubr.msk.f32.vlgmr.msra.gmra.mxu0 %vm194_vm1, %v647_v63 }
 0x3f8   :  { %v1005_v20 = vpop.f32.mrf.mxu0 }
 0x3f9   :  { %v738_v7 = vadd.f32 %v1005_v20, %v658_v4 }
 0x3fa   :  { %v732_v3 = vpop.f32.mrf.mxu0 }
 0x3fb   :  { %v733_v5 = vadd.f32 %v732_v3, %v653_v2 }
 0x3fd   :  { %1010 = vmatprep.mubr.f32.mxu1 %v733_v5 }
 0x3fe   :  { %1011 = vmatmul.mubr.f32.vlgmr.msra.gmra.mxu1 %v738_v7 }
 0x4be   :  { %v1012_v9 = vpop.f32.mrf.mxu1 }
 0x4bf   :  { %v819_v12 = vadd.f32 %v1012_v9, %v742_v62 }
 0x4c0   :  { %v809_v6 = vpop.f32.mrf.mxu1 }
 0x4c1   :  { %821 = vst.msk [vmem:[#allocation3 + $0x8] sm:$0xff] %vm194_vm1, %v819_v12  ;;  %v818_v28 = vadd.f32 %v809_v6, %v741_v10 }
 0x4c3   :  { %820 = vst.msk [vmem:[#allocation3] sm:$0xff] %vm194_vm1, %v818_v28 }
 0x4c8   :  { %v826_v14 = vld [vmem:[#allocation3 + $0x8] sm:$0xff] }
 0x4c9   :  { %1013 = vmatprep.subr.msk.mxu0 %vm194_vm1, %v826_v14 }
 0x4ca   :  { %1014 = vmatpush3.xpose.msk.msra.mxu0 %vm194_vm1, %v826_v14  ;;  %v825_v15 = vld [vmem:[#allocation3] sm:$0xff] }
 0x4cb   :  { %1015 = vmatprep.subr.msk.mxu0 %vm194_vm1, %v825_v15  ;;  %1017 = vmatprep.mubr.msk.f32.mxu0 %vm194_vm1, %v825_v15 }
 0x4ce   :  { %1016 = vmatpush3.xpose.msk.msra.mxu0 %vm194_vm1, %v825_v15 }
 0x4d1   :  { %1018 = vmatmul.mubr.msk.f32.vlgmr.msra.gmra.mxu0 %vm194_vm1, %v826_v14 }
 0x591   :  { %v1019_v16 = vpop.f32.mrf.mxu0 }
 0x592   :  { %909 = vst.msk [vmem:[#allocation7 + $0x8] sm:$0xff] %vm194_vm1, %v1019_v16 }
 0x593   :  { %v899_v0 = vpop.f32.mrf.mxu0 }
 0x594   :  { %908 = vst.msk [vmem:[#allocation7] sm:$0xff] %vm194_vm1, %v899_v0 }
 0x595   :  { %1103 = shalt.err (!%p1100_p9)
}
 0x596   :  { %s1127_s9 = smov 128   ;;  %s1128_s10 = smov 8  }
 0x597   :  { %921 = dma.vmem_to_hbm [thread:$0]  %s916_s29, 256, %s1391_s8, [#allocation6], %s1127_s9, %s1127_s9, %s1128_s10  }
 0x598   :  { %1114 = dma.done.wait [#allocation6], 256  }
 0x599   :  { %1115 = vsyncadd [#allocation6], 4294967040 }
 0x59a   :  { %925 = vsyncpa [#allocation5], 1 }
 0x59b   :  { %926 = vsyncpa [#allocation6], 1 }

</bundles_post_ra>
